<compile_context>
chip_gen: v7x
topology: tpu7x:2x2x1
jax: 0.10.0
libtpu: 0.0.40
codegen_flags: <defaults>
</compile_context>

<pallas_src>
import jax
import jax.numpy as jnp
from jax.experimental import pallas as pl
from jax.experimental.pallas import tpu as pltpu


def _cdiv(a, b):
    return -(-a // b)


def _vmem_caps():
    """Return (physical VMEM/core, tile-sizing budget, scoped-limit target)."""
    try:
        cap = int(pltpu.get_tpu_info().vmem_capacity_bytes)
    except Exception:
        cap = 64 << 20          # conservative fallback: v7x has 64 MiB per TC
    budget = (cap * 3) // 8     # ~37.5% of VMEM for the streamed working set
    limit = min((cap * 3) // 5, budget + (40 << 20))   # ~60% scoped limit
    return cap, budget, limit


def _make_lm_head_kernel(has_scale, has_bias):
    """Build a kernel variant; refs are (x, w, [scale], [bias], out)."""

    def kernel(*refs):
        x_ref, w_ref = refs[0], refs[1]
        i = 2
        s_ref = b_ref = None
        if has_scale:
            s_ref = refs[i]
            i += 1
        if has_bias:
            b_ref = refs[i]
            i += 1
        o_ref = refs[i]

        w = w_ref[...]
        if w.dtype != x_ref.dtype:
            # Quantized-weight path: the narrow dtype (int8/fp8) only exists to
            # shrink the HBM stream; upcast the VMEM tile to the activation
            # dtype so the MXU sees one dtype. The VPU cast hides under the
            # next weight-tile DMA (kernel is HBM-bound).
            w = w.astype(x_ref.dtype)

        # x:(M,H) . w:(tn,H)^T -> (M,tn).  Contraction on the last dim of both
        # operands is the canonical trans_b form (same dimension_numbers the
        # reference TPU flash-attention kernel uses) and does not require an
        # XLU transpose of the streamed tile.
        acc = jax.lax.dot_general(
            x_ref[...], w,
            dimension_numbers=(((1,), (1,)), ((), ())),
            preferred_element_type=jnp.float32,
        )
        if has_scale:
            acc = acc * s_ref[...].astype(jnp.float32)   # per-vocab-row dequant
        if has_bias:
            acc = acc + b_ref[...].astype(jnp.float32)
        o_ref[...] = acc.astype(o_ref.dtype)

    return kernel


def _choose_vocab_tile(V, H, M, w_bytes, x_bytes, out_bytes, extra_row_bytes,
                       cast_copy_bytes, vmem_budget, tn_cap=8192):
    """Largest vocab tile (multiple of 128) whose double-buffered working set
    fits `vmem_budget`, then adjusted so the number of vocab tiles is even
    (keeps both v7x TensorCores busy; the extra step is noise on 1-TC chips)."""
    fixed = 2 * M * H * x_bytes                       # resident x (dbl-buffered)
    per_tn = (2 * H * w_bytes                         # weight tiles (dbl-buffered)
              + 2 * M * out_bytes                     # output tiles
              + 2 * extra_row_bytes                   # scale / bias rows
              + H * cast_copy_bytes)                  # in-kernel upcast temp
    tn = (vmem_budget - fixed) // max(per_tn, 1)
    tn = int(min(tn, tn_cap, V))
    tn = max(128, (tn // 128) * 128)
    if tn >= V:
        return V                                      # single full-vocab tile
    # Prefer an even tile count so the megacore split of the "parallel" axis
    # is balanced.  Best effort: shrink in 128 steps; give up at 128.
    t = tn
    while t > 128 and _cdiv(V, t) % 2 == 1:
        t -= 128
    if _cdiv(V, t) % 2 == 0:
        tn = t
    return tn


def lm_head_logits(x_sel, weight, bias=None, weight_scale=None, *, tn=None,
                   out_dtype=jnp.float32):
    """F.linear(x_sel, W, bias) as a vocab-tiled Pallas matmul with optional
    per-row weight dequantization.

    x_sel:        [M, H]  already-gathered last-token hidden states.
    weight:       [V, H]  nn.Linear layout.  Store bf16 to halve the HBM
                  stream, or int8 (v5e/v6e) / fp8 (v7x) + weight_scale for
                  another 2x: this kernel is pure weight streaming.
    weight_scale: [V] per-vocab-row dequant scale (f32) or None.
    bias:         [V] or None.
    out_dtype:    logits dtype (f32 MXU accumulation either way; pass bf16 to
                  halve the M*V writeback for large decode batches).
    returns       [M, V] logits.
    """
    M, H = x_sel.shape
    V, H2 = weight.shape
    assert H == H2, (H, H2)
    if weight_scale is not None:
        assert weight_scale.shape == (V,), weight_scale.shape
    if bias is not None:
        assert bias.shape == (V,), bias.shape

    w_dt = jnp.dtype(weight.dtype)
    quantized = (weight_scale is not None
                 or jnp.issubdtype(w_dt, jnp.integer)
                 or w_dt.itemsize < 2)
    if quantized:
        # Never downcast activations to the narrow weight dtype; keep them in a
        # float compute dtype and let the kernel upcast the weight tile.
        compute_dtype = jnp.bfloat16 if x_sel.dtype == jnp.float32 else x_sel.dtype
    else:
        compute_dtype = weight.dtype
    if x_sel.dtype != compute_dtype:
        x_sel = x_sel.astype(compute_dtype)

    w_bytes = w_dt.itemsize
    x_bytes = jnp.dtype(compute_dtype).itemsize
    out_bytes = jnp.dtype(out_dtype).itemsize
    scale_bytes = 4 if weight_scale is not None else 0
    bias_bytes = jnp.dtype(bias.dtype).itemsize if bias is not None else 0
    cast_copy_bytes = x_bytes if w_dt != jnp.dtype(compute_dtype) else 0

    cap, budget, limit = _vmem_caps()
    if tn is None:
        tn = _choose_vocab_tile(V, H, M, w_bytes, x_bytes, out_bytes,
                                scale_bytes + bias_bytes, cast_copy_bytes,
                                budget)
    tn = int(min(tn, V))

    grid = (_cdiv(V, tn),)

    x_spec = pl.BlockSpec((M, H), lambda j: (0, 0))      # resident across grid
    w_spec = pl.BlockSpec((tn, H), lambda j: (j, 0))     # the streamed operand
    out_spec = pl.BlockSpec((M, tn), lambda j: (0, j))   # lane-dense stores

    in_specs = [x_spec, w_spec]
    operands = [x_sel, weight]
    if weight_scale is not None:
        in_specs.append(pl.BlockSpec((1, tn), lambda j: (0, j)))
        operands.append(weight_scale.astype(jnp.float32).reshape(1, V))
    if bias is not None:
        in_specs.append(pl.BlockSpec((1, tn), lambda j: (0, j)))
        operands.append(bias.reshape(1, V))

    cost = pl.CostEstimate(
        flops=2 * M * V * H,
        transcendentals=0,
        bytes_accessed=int(V * H * w_bytes + M * H * x_bytes
                           + M * V * out_bytes + V * (scale_bytes + bias_bytes)),
    )

    vmem_bytes = (2 * M * H * x_bytes
                  + 2 * tn * H * w_bytes
                  + 2 * M * tn * out_bytes
                  + 2 * tn * (scale_bytes + bias_bytes)
                  + tn * H * cast_copy_bytes)
    vmem_limit = int(max(limit, vmem_bytes + (4 << 20)))
    vmem_limit = int(min(vmem_limit, cap - (4 << 20)))

    kernel = _make_lm_head_kernel(weight_scale is not None, bias is not None)

    return pl.pallas_call(
        kernel,
        out_shape=jax.ShapeDtypeStruct((M, V), out_dtype),
        grid_spec=pltpu.PrefetchScalarGridSpec(
            num_scalar_prefetch=0,
            grid=grid,
            in_specs=in_specs,
            out_specs=out_spec,
        ),
        compiler_params=pltpu.CompilerParams(
            dimension_semantics=("parallel",),
            vmem_limit_bytes=vmem_limit,
        ),
        cost_estimate=cost,
    )(*operands)


def parallel_lm_head_forward(x, weight, cu_seqlens_q=None, bias=None,
                             weight_scale=None, *, is_prefill=True,
                             out_dtype=jnp.float32):
    """ParallelLMHead.forward (tp_size=1, tp_rank=0)."""
    if is_prefill:
        # M = num_seqs rows of H: tiny next to the V*H weight stream, so the
        # gather stays in plain JAX rather than being fused via pl.Element
        # (fusing it would either re-stream the weight per row or force
        # 1-sublane output blocks).
        last_indices = cu_seqlens_q[1:] - 1
        x = jnp.take(x, last_indices, axis=0)
    return lm_head_logits(x, weight, bias=bias, weight_scale=weight_scale,
                          out_dtype=out_dtype)


if __name__ == "__main__":
    # Small shapes consistent with the module.
    num_embeddings = 256    # vocab size (per-partition, tp_size=1)
    embedding_dim = 128     # hidden dim
    num_seqs = 2
    seq_len = 8
    T = num_seqs * seq_len  # total tokens in the prefill batch

    key = jax.random.PRNGKey(0)
    kx, kw, kb = jax.random.split(key, 3)

    w_f32 = jax.random.normal(kw, (num_embeddings, embedding_dim),
                              dtype=jnp.float32) * 0.02
    weight = w_f32.astype(jnp.bfloat16)    # bf16 storage: half the HBM stream
    x = jax.random.normal(kx, (T, embedding_dim), dtype=jnp.float32)
    cu_seqlens_q = jnp.array([0, seq_len, 2 * seq_len], dtype=jnp.int32)

    x_sel = x[cu_seqlens_q[1:] - 1]
    # Reference in the kernel's compute precision (bf16 inputs, f32 accumulate).
    ref = jnp.dot(x_sel.astype(jnp.bfloat16).astype(jnp.float32),
                  weight.astype(jnp.float32).T)

    # 1) Module default: bias=False, bf16 weight streaming, auto tile.
    logits = parallel_lm_head_forward(x, weight, cu_seqlens_q)
    logits = jax.block_until_ready(logits)
    assert logits.shape == (num_seqs, num_embeddings)
    assert jnp.allclose(logits, ref, atol=5e-3, rtol=5e-3)

    # 2) bias=True path + forced multi-tile grid (exercises the vocab tiling).
    bias = jax.random.normal(kb, (num_embeddings,), dtype=jnp.float32) * 0.02
    logits_b = lm_head_logits(x_sel, weight, bias=bias, tn=128)
    logits_b = jax.block_until_ready(logits_b)
    assert jnp.allclose(logits_b, ref + bias[None, :], atol=5e-3, rtol=5e-3)

    # 3) Quantized weight path: int8 storage + per-row dequant scale
    #    (the v5e/v6e serving config; use fp8 the same way on v7x).
    amax = jnp.max(jnp.abs(w_f32), axis=1)
    scale = (amax / 127.0).astype(jnp.float32)
    w_int8 = jnp.round(w_f32 / scale[:, None]).astype(jnp.int8)
    logits_q = lm_head_logits(x_sel, w_int8, weight_scale=scale, tn=128)
    logits_q = jax.block_until_ready(logits_q)
    ref_q = jnp.dot(x_sel.astype(jnp.bfloat16).astype(jnp.float32),
                    w_int8.astype(jnp.float32).T) * scale[None, :]
    assert jnp.allclose(logits_q, ref_q, atol=5e-3, rtol=5e-3)

    print("KERNEL_OK")
</pallas_src>

<mosaic_0001>
module attributes {stable_mosaic.version = 11 : i64} {
  func.func @kernel(%arg0: i32, %arg1: memref<2x128xbf16, #tpu.memory_space<vmem>>, %arg2: memref<256x128xbf16, #tpu.memory_space<vmem>>, %arg3: memref<2x256xf32, #tpu.memory_space<vmem>>) attributes {dimension_semantics = [#tpu.dimension_semantics<parallel>], iteration_bounds = array<i64: 1>, scalar_prefetch = 0 : i64, scratch_operands = 0 : i64, tpu.core_type = #tpu.core_type<tc>, window_params = [{pipeline_mode = #tpu.pipeline_mode<synchronous>, transform_indices = @transform_0, window_bounds = array<i64: 2, 128>}, {transform_indices = @transform_1, window_bounds = array<i64: 256, 128>}, {transform_indices = @transform_2, window_bounds = array<i64: 2, 256>}]} {
    %c0 = arith.constant 0 : index
    %c0_0 = arith.constant 0 : index
    %0 = vector.load %arg2[%c0, %c0_0] : memref<256x128xbf16, #tpu.memory_space<vmem>>, vector<256x128xbf16>
    %c0_1 = arith.constant 0 : index
    %c0_2 = arith.constant 0 : index
    %1 = vector.load %arg1[%c0_1, %c0_2] : memref<2x128xbf16, #tpu.memory_space<vmem>>, vector<2x128xbf16>
    %cst = arith.constant dense<0.000000e+00> : vector<2x256xf32>
    %2 = tpu.matmul %1, %0, %cst {dimension_numbers = #tpu.dot_dimension_numbers<[1], [1], [0], [0], [0, 0, 1, 0], [], []>} : vector<2x128xbf16>, vector<256x128xbf16>, vector<2x256xf32> -> vector<2x256xf32>
    %c0_3 = arith.constant 0 : index
    %c0_4 = arith.constant 0 : index
    %3 = vector.load %arg3[%c0_3, %c0_4] : memref<2x256xf32, #tpu.memory_space<vmem>>, vector<2x256xf32>
    tpu.vector_store %arg3[%c0_3, %c0_4], %2 {strides = array<i32>} : memref<2x256xf32, #tpu.memory_space<vmem>>, vector<2x256xf32>,
    return
  }
  func.func @transform_0(%arg0: i32) -> (i32, i32) {
    %c0_i32 = arith.constant 0 : i32
    %c0_i32_0 = arith.constant 0 : i32
    %c0_i32_1 = arith.constant 0 : i32
    return %c0_i32, %c0_i32_0 : i32, i32
  }
  func.func @transform_1(%arg0: i32) -> (i32, i32) {
    %c0_i32 = arith.constant 0 : i32
    %c0_i32_0 = arith.constant 0 : i32
    return %arg0, %c0_i32 : i32, i32
  }
  func.func @transform_2(%arg0: i32) -> (i32, i32) {
    %c0_i32 = arith.constant 0 : i32
    %c0_i32_0 = arith.constant 0 : i32
    return %c0_i32, %arg0 : i32, i32
  }
}

</mosaic_0001>

<bundles_post_ra>
// kernel: tpu_custom_call.1
= control target key start
LH: loop header
LB: loop body
LE: loop exit
PB: predicated region body
PF: predicated region fallthrough
CT: control target
= control target key end

     0   :  { %7 = vsyncpa [#allocation3], 0  ;;  %s428_s0 = inlined_call_operand.hbm [shape: bf16[2,128], index: 0, kind: input, shape index: {}]   ;;  %s429_s1 = inlined_call_operand.hbm [shape: bf16[256,128], index: 1, kind: input, shape index: {}]   ;;  %s430_s2 = inlined_call_operand.hbm [shape: f32[2,256], index: 2, kind: output, shape index: {}]  }
   0x1   :  { %8 = vsyncpa [#allocation6], 0 }
   0x2   :  { %9 = vsyncpa [#allocation4], 0  ;;  %s365_s9 = smov [#allocation2]   ;;  %s366_s11 = smov [#allocation5]  }
   0x3   :  { %s16_s10 = sshll.u32 %s365_s9, 4  ;;  %s25_s12 = sshll.u32 %s366_s11, 4  ;;  %s17_s10 = int_to_ptr.vmem [resolvable:$true] %s16_s10  ;;  %s385_s12 = int_to_ptr.vmem [resolvable:$true] %s25_s12 }
   0x4   :  { %s293_s15 = scalar_lea.hbm %s428_s0, 16 }
   0x5   :  { %p294_p0 = scmp.ne.s32.totalorder %s428_s0, %s293_s15  ;;  %p297_p1 = scmp.lt.u32.totalorder %s293_s15, %s428_s0 }
   0x7   :  { %p299_p2 = pnand %p297_p1, %p294_p0 }
   0x9   :  { %302 = shalt.err (!%p299_p2)
}
   0xa   :  { %s303_s20 = scalar_lea.vmem %s17_s10, 16  ;;  %s307_s21 = scalar_lea.vmem %s17_s10, 32 }
   0xb   :  { %p304_p3 = scmp.ne.s32.totalorder %s17_s10, %s303_s20  ;;  %p308_p4 = scmp.lt.s32.totalorder %s17_s10, %s17_s10 }
   0xc   :  { %p309_p5 = scmp.lt.s32.totalorder %s307_s21, %s303_s20 }
   0xe   :  { %p310_p6 = por %p309_p5, %p308_p4 }
  0x10   :  { %p311_p7 = pnand %p310_p6, %p304_p3 }
  0x12   :  { %314 = shalt.err (!%p311_p7)
}
  0x13   :  { %19 = dma.hbm_to_vmem [thread:$0]  %s428_s0, 16, %s17_s10, [#allocation3]  }
  0x14   :  { %s315_s26 = scalar_lea.hbm %s429_s1, 2048 }
  0x15   :  { %p316_p8 = scmp.ne.s32.totalorder %s429_s1, %s315_s26  ;;  %p319_p9 = scmp.lt.u32.totalorder %s315_s26, %s429_s1 }
  0x17   :  { %p321_p10 = pnand %p319_p9, %p316_p8 }
  0x19   :  { %324 = shalt.err (!%p321_p10)
}
  0x1a   :  { %s325_s3 = scalar_lea.vmem %s385_s12, 2048  ;;  %p330_p12 = scmp.lt.s32.totalorder %s385_s12, %s385_s12 }
  0x1b   :  { %p326_p11 = scmp.ne.s32.totalorder %s385_s12, %s325_s3  ;;  %p331_p13 = scmp.lt.s32.totalorder %s325_s3, %s325_s3 }
  0x1d   :  { %p332_p0 = por %p331_p13, %p330_p12 }
  0x1f   :  { %p333_p1 = pnand %p332_p0, %p326_p11 }
  0x21   :  { %336 = shalt.err (!%p333_p1)
}
  0x22   :  { %s367_s0 = smov 64   ;;  %s368_s4 = smov 4  }
  0x23   :  { %31 = dma.hbm_to_vmem [thread:$0]  %s429_s1, 2048, %s385_s12, [#allocation6], %s367_s0, %s367_s0, %s368_s4  }
  0x24   :  { %359 = dma.done.wait [#allocation3], 16  }
  0x25   :  { %360 = vsyncadd [#allocation3], 4294967280 }
  0x26   :  { %361 = dma.done.wait [#allocation6], 2048  }
  0x27   :  { %362 = vsyncadd [#allocation6], 4294965248  ;;  %v277_v0 = vld [vmem:[#allocation5 + $0x40] sm:$0xff]   ;;  %v279_v2 = vld [vmem:[#allocation5 + $0x48] sm:$0xff]   ;;  %s369_s1 = smov [#allocation7]  }
  0x28   :  { %v278_v1 = vld [vmem:[#allocation5] sm:$0xff]   ;;  %254 = vmatprep.subr.bf16.mxu0 %v277_v0  ;;  %v280_v3 = vld [vmem:[#allocation5 + $0x8] sm:$0xff]   ;;  %v281_v4 = vld [vmem:[#allocation5 + $0x50] sm:$0xff]   ;;  %s227_s7 = sshll.u32 %s369_s1, 4  ;;  %s228_s7 = int_to_ptr.vmem [resolvable:$true] %s227_s7 }
  0x29   :  { %255 = vmatpush3.bf16.xpose.msra.mxu0 %v278_v1  ;;  %v282_v5 = vld [vmem:[#allocation5 + $0x10] sm:$0xff]   ;;  %v283_v6 = vld [vmem:[#allocation5 + $0x58] sm:$0xff]   ;;  %v285_v9 = vld [vmem:[#allocation5 + $0x60] sm:$0xff]   ;;  %s337_s8 = scalar_lea.vmem %s228_s7, 64  ;;  %p342_p3 = scmp.lt.s32.totalorder %s228_s7, %s228_s7 }
  0x2a   :  { %256 = vmatprep.subr.bf16.mxu0 %v279_v2  ;;  %v71_v7 = vld [vmem:[#allocation2] sm:$0x1]  ;;  %v286_v10 = vld [vmem:[#allocation5 + $0x20] sm:$0xff]   ;;  %v287_v11 = vld [vmem:[#allocation5 + $0x68] sm:$0xff]   ;;  %p338_p2 = scmp.ne.s32.totalorder %s228_s7, %s337_s8  ;;  %p343_p4 = scmp.lt.s32.totalorder %s337_s8, %s337_s8 }
  0x2b   :  { %270 = vmatprep.mubr.bf16.mxu0 %v71_v7  ;;  %v284_v8 = vld [vmem:[#allocation5 + $0x18] sm:$0xff]   ;;  %v288_v12 = vld [vmem:[#allocation5 + $0x28] sm:$0xff]   ;;  %v289_v13 = vld [vmem:[#allocation5 + $0x70] sm:$0xff]  }
  0x2c   :  { %v290_v14 = vld [vmem:[#allocation5 + $0x30] sm:$0xff]   ;;  %v291_v15 = vld [vmem:[#allocation5 + $0x78] sm:$0xff]   ;;  %p344_p5 = por %p343_p4, %p342_p3 }
  0x2d   :  { %v292_v16 = vld [vmem:[#allocation5 + $0x38] sm:$0xff]  }
  0x2e   :  { %p345_p6 = pnand %p344_p5, %p338_p2 }
  0x31   :  { %257 = vmatpush3.bf16.xpose.msra.mxu0 %v280_v3 }
  0x32   :  { %258 = vmatprep.subr.bf16.mxu0 %v281_v4 }
  0x39   :  { %259 = vmatpush3.bf16.xpose.msra.mxu0 %v282_v5 }
  0x3a   :  { %260 = vmatprep.subr.bf16.mxu0 %v283_v6 }
  0x41   :  { %261 = vmatpush3.bf16.xpose.msra.mxu0 %v284_v8 }
  0x42   :  { %262 = vmatprep.subr.bf16.mxu0 %v285_v9 }
  0x49   :  { %263 = vmatpush3.bf16.xpose.msra.mxu0 %v286_v10 }
  0x4a   :  { %264 = vmatprep.subr.bf16.mxu0 %v287_v11 }
  0x51   :  { %265 = vmatpush3.bf16.xpose.msra.mxu0 %v288_v12 }
  0x52   :  { %266 = vmatprep.subr.bf16.mxu0 %v289_v13 }
  0x59   :  { %267 = vmatpush3.bf16.xpose.msra.mxu0 %v290_v14 }
  0x5a   :  { %268 = vmatprep.subr.bf16.mxu0 %v291_v15 }
  0x61   :  { %269 = vmatpush3.bf16.xpose.msra.mxu0 %v292_v16 }
  0x68   :  { %271 = vmatmul.mubr.bf16.vlgmr.msra.gmra.mrb[0].mxu0 %v71_v7 }
 0x13b   :  { %v202_v17 = vpop.f32.mrb[0].mxu0 }
 0x13c   :  { %v204_v18 = vpop.f32.mrb[1].mxu0 }
 0x13d   :  { %v211_v19 = vcombine.low %v202_v17, %v204_v18  ;;  %v206_v20 = vpop.f32.mrb[2].mxu0 }
 0x13e   :  { %v207_v21 = vpop.f32.mrb[3].mxu0 }
 0x13f   :  { %253 = vst.sshfl [vmem:[#allocation7] sm:$0x33 pattern:$0x76325410] %v211_v19 }
 0x140   :  { %348 = shalt.err (!%p345_p6)
}
 0x141   :  { %s349_s11 = scalar_lea.hbm %s430_s2, 64 }
 0x142   :  { %p350_p7 = scmp.ne.s32.totalorder %s430_s2, %s349_s11  ;;  %p353_p8 = scmp.lt.u32.totalorder %s349_s11, %s430_s2 }
 0x144   :  { %p355_p9 = pnand %p353_p8, %p350_p7 }
 0x146   :  { %358 = shalt.err (!%p355_p9)
}
 0x147   :  { %230 = dma.vmem_to_hbm [thread:$0]  %s228_s7, 64, %s430_s2, [#allocation4]  }
 0x148   :  { %363 = dma.done.wait [#allocation4], 64  }
 0x149   :  { %364 = vsyncadd [#allocation4], 4294967232 }
 0x14a   :  { %234 = vsyncpa [#allocation3], 1 }
 0x14b   :  { %235 = vsyncpa [#allocation6], 1 }
 0x14c   :  { %236 = vsyncpa [#allocation4], 1 }

</bundles_post_ra>
